<compile_context>
chip_gen: v7x
topology: tpu7x:2x2x1
jax: 0.10.0
libtpu: 0.0.40
codegen_flags: <defaults>
</compile_context>

<pallas_src>
import functools

import jax
import jax.numpy as jnp
from jax.experimental import pallas as pl
from jax.experimental.pallas import tpu as pltpu

_LANE = 128
_SUBLANE = 8


def _round_up(x, m):
    return (x + m - 1) // m * m


def _vmem_capacity_bytes():
    """Per-core VMEM capacity; conservative fallback if the query is unavailable."""
    try:
        return int(pltpu.get_tpu_info().vmem_capacity_bytes)
    except Exception:
        return 64 << 20  # v7x per-TC size: safe lower bound for all generations


def _pick_tile_b(batch):
    """Batch tile: 8-sublane aligned. With B >= 16 this yields >= 2 steps on the
    'parallel' grid axis, sharding batch tiles across v7x's two TensorCores."""
    if batch % _SUBLANE == 0:
        return _SUBLANE
    return batch  # tiny / odd batches: single full-extent tile (still correct)


def _pick_tile_s(spatial, tb, rows, target_block_bytes):
    """Largest 128-multiple divisor of `spatial` whose x block fits the byte target.

    Block bytes ~= tb * round_up(rows, 8) * ts * 4 (f32).  Multi-MiB blocks give
    long contiguous DMA rows (ts*4 bytes each) and few grid steps, amortizing the
    ~0.35us/step pipeline overhead; the double-buffered pair stays well inside
    VMEM on every generation.
    """
    if spatial % _LANE != 0:
        return spatial  # irregular S: single full-extent block
    bytes_per_lane = tb * _round_up(rows, _SUBLANE) * 4
    max_ts = max(_LANE, target_block_bytes // bytes_per_lane)
    if max_ts >= spatial:
        return spatial
    best = _LANE
    for ts in range(_LANE, spatial + 1, _LANE):
        if ts > max_ts:
            break
        if spatial % ts == 0:
            best = ts
    return best


def _net_kernel(x_ref, w1_ref, b1_ref, w2_ref, b2_ref, out_ref, acc_ref, *,
                inv_denom, lane_tiles):
    """Fused spatial/channel mean-reduction + Linear->ReLU->Linear.

    Grid = (B // tb, S // ts); the spatial axis is a reduction axis.
    Steady state: accumulate 128-wide lane tiles of the (tb, rows, ts) block
    into acc_ref (tb, rows, 128) — pure VPU adds, no cross-lane work.
    Last spatial step: one 128->1 lane reduce, scale by 1/(3*S), then the MLP
    head (channel sum folded into the 3x-tiled w1).
    """
    s = pl.program_id(1)

    @pl.when(s == 0)
    def _():
        acc_ref[...] = jnp.zeros_like(acc_ref)

    if lane_tiles:
        # ts is a multiple of 128: 128-aligned lane-tile slices -> vld + VPU add,
        # hidden under the multi-MiB block DMA on every generation.
        for t in range(lane_tiles):
            acc_ref[...] += x_ref[:, :, t * _LANE:(t + 1) * _LANE].astype(jnp.float32)
    else:
        # ts == S and S % 128 != 0: single spatial step, so the cross-lane
        # reduce happens exactly once and is off any steady-state path.
        acc_ref[...] += jnp.sum(x_ref[...].astype(jnp.float32), axis=-1)

    @pl.when(s == pl.num_programs(1) - 1)
    def _():
        acc = acc_ref[...]
        if lane_tiles:
            acc = jnp.sum(acc, axis=-1)            # single 128->1 XLU reduce per batch tile
        feat = acc * inv_denom                     # (tb, 102): mean over [channel, spatial]
        # w1_ref is w1 tiled 3x along its input dim, so this matmul performs the
        # channel sum and the 34->H projection in one MXU pass.
        h = jnp.dot(feat, w1_ref[...],
                    preferred_element_type=jnp.float32) + b1_ref[...]
        h = jnp.maximum(h, 0.0)                    # ReLU
        out = jnp.dot(h, w2_ref[...],
                      preferred_element_type=jnp.float32) + b2_ref[...]
        out_ref[...] = out.astype(out_ref.dtype)


def net_forward(x, w1, b1, w2, b2, *, tile_b=None, tile_s=None):
    """x: (B, 3, 34, S). Returns (B, nb_classes) float32."""
    B, C_in, F, S = x.shape
    assert C_in == 3 and F == 34
    H = w1.shape[1]
    C = w2.shape[1]
    rows = C_in * F                                               # 102

    vmem_cap = _vmem_capacity_bytes()
    # 128 MiB parts (v5e/v6e): ~20 MiB blocks; 64 MiB/TC (v7x): ~12 MiB blocks.
    target_block = (20 << 20) if vmem_cap >= (100 << 20) else (12 << 20)

    tb = _pick_tile_b(B) if tile_b is None else tile_b
    assert B % tb == 0, "tile_b must divide batch"
    ts = _pick_tile_s(S, tb, rows, target_block) if tile_s is None else tile_s
    assert S % ts == 0, "tile_s must divide spatial extent"
    assert ts % _LANE == 0 or ts == S, "tile_s must be a multiple of 128 or the full extent"

    use_lane_acc = (ts % _LANE == 0)
    lane_tiles = (ts // _LANE) if use_lane_acc else 0
    acc_shape = (tb, rows, _LANE) if use_lane_acc else (tb, rows)

    # Flatten (3, 34) -> 102 rows: dense sublane packing, one contiguous slab,
    # and ts*4-byte contiguous DMA runs per block row.
    x2 = x.reshape(B, rows, S)
    # Fold the channel reduction into the first matmul: rows of x2 are indexed
    # by r = c*34 + f, and tiling w1 three times along its input dim makes
    # sum_r acc[b, r] * w1_tiled[r] == (sum_c sum_s x[b,c,f,s]) @ w1.
    w1_exp = jnp.tile(w1, (C_in, 1))                              # (102, H)
    b1_2d = b1.reshape(1, H)
    b2_2d = b2.reshape(1, C)

    itemsize = x2.dtype.itemsize
    rows_pad = _round_up(rows, _SUBLANE)
    block_bytes = tb * rows_pad * ts * itemsize
    if use_lane_acc:
        acc_bytes = tb * rows_pad * _LANE * 4
    else:
        acc_bytes = _round_up(tb, _SUBLANE) * _round_up(rows, _LANE) * 4
    # Double-buffered x block + accumulator + weights/output headroom, capped
    # below the physical per-core VMEM of the current generation.
    vmem_limit = int(min(2 * block_bytes + acc_bytes + (8 << 20),
                         int(vmem_cap * 0.85)))
    vmem_limit = max(vmem_limit, 32 << 20)

    cost = pl.CostEstimate(
        flops=int(2 * B * rows * S + 2 * B * rows * H + 2 * B * H * C),
        transcendentals=0,
        bytes_accessed=int(B * rows * S * itemsize
                           + rows * H * 4 + H * C * 4 + (H + C) * 4
                           + B * C * 4))

    kernel = functools.partial(_net_kernel,
                               inv_denom=1.0 / float(C_in * S),
                               lane_tiles=lane_tiles)

    return pl.pallas_call(
        kernel,
        out_shape=jax.ShapeDtypeStruct((B, C), jnp.float32),
        grid_spec=pltpu.PrefetchScalarGridSpec(
            num_scalar_prefetch=0,
            grid=(B // tb, S // ts),
            in_specs=[
                pl.BlockSpec((tb, rows, ts), lambda b, s: (b, 0, s)),
                pl.BlockSpec((rows, H), lambda b, s: (0, 0)),
                pl.BlockSpec((1, H), lambda b, s: (0, 0)),
                pl.BlockSpec((H, C), lambda b, s: (0, 0)),
                pl.BlockSpec((1, C), lambda b, s: (0, 0)),
            ],
            out_specs=pl.BlockSpec((tb, C), lambda b, s: (b, 0)),
            scratch_shapes=[pltpu.VMEM(acc_shape, jnp.float32)],
        ),
        compiler_params=pltpu.CompilerParams(
            dimension_semantics=("parallel", "arbitrary"),
            vmem_limit_bytes=vmem_limit),
        cost_estimate=cost,
    )(x2, w1_exp, b1_2d, w2, b2_2d)


def reference_forward(x, w1, b1, w2, b2):
    feat = jnp.mean(x.astype(jnp.float32), axis=(1, 3))
    h = jnp.maximum(feat @ w1 + b1, 0.0)
    return h @ w2 + b2


if __name__ == "__main__":
    # Small but module-consistent shapes (PyTorch hardcodes S=224*224; the
    # kernel parameterizes S with identical semantics).
    NB_CLASSES, HIDDEN = 10, 128

    key = jax.random.PRNGKey(0)
    kx, k1, k2, k3, k4 = jax.random.split(key, 5)

    # Deterministic PyTorch-Linear-style init: U(-1/sqrt(fan_in), 1/sqrt(fan_in)).
    bound1 = 1.0 / (34.0 ** 0.5)
    bound2 = 1.0 / (HIDDEN ** 0.5)
    w1 = jax.random.uniform(k1, (34, HIDDEN), jnp.float32, -bound1, bound1)
    b1 = jax.random.uniform(k2, (HIDDEN,), jnp.float32, -bound1, bound1)
    w2 = jax.random.uniform(k3, (HIDDEN, NB_CLASSES), jnp.float32, -bound2, bound2)
    b2 = jax.random.uniform(k4, (NB_CLASSES,), jnp.float32, -bound2, bound2)

    # Case 1: tiny batch, S multiple of 128 -> single-block lane-tile path.
    x_a = jax.random.normal(kx, (2, 3, 34, 256), dtype=jnp.float32)
    ref_a = reference_forward(x_a, w1, b1, w2, b2)
    out_a = jax.block_until_ready(net_forward(x_a, w1, b1, w2, b2))
    assert out_a.shape == (2, NB_CLASSES)
    assert jnp.allclose(out_a, ref_a, atol=1e-4, rtol=1e-4), "mismatch (case 1)"

    # Case 2: forced multi-step spatial accumulation (grid reduction path).
    out_b = jax.block_until_ready(net_forward(x_a, w1, b1, w2, b2, tile_s=128))
    assert jnp.allclose(out_b, ref_a, atol=1e-4, rtol=1e-4), "mismatch (case 2)"

    # Case 3: S not a multiple of 128 -> full-extent fallback reduce path.
    x_c = jax.random.normal(kx, (2, 3, 34, 192), dtype=jnp.float32)
    ref_c = reference_forward(x_c, w1, b1, w2, b2)
    out_c = jax.block_until_ready(net_forward(x_c, w1, b1, w2, b2))
    assert jnp.allclose(out_c, ref_c, atol=1e-4, rtol=1e-4), "mismatch (case 3)"

    # Case 4: 8-aligned batch -> tb=8, >=2 steps on the parallel (batch) axis.
    x_d = jax.random.normal(kx, (16, 3, 34, 384), dtype=jnp.float32)
    ref_d = reference_forward(x_d, w1, b1, w2, b2)
    out_d = jax.block_until_ready(net_forward(x_d, w1, b1, w2, b2))
    assert jnp.allclose(out_d, ref_d, atol=1e-4, rtol=1e-4), "mismatch (case 4)"

    print("KERNEL_OK")
</pallas_src>

<mosaic_0001>
module attributes {stable_mosaic.version = 11 : i64} {
  func.func @_net_kernel(%arg0: i32, %arg1: i32, %arg2: memref<2x102x256xf32, #tpu.memory_space<vmem>>, %arg3: memref<102x128xf32, #tpu.memory_space<vmem>>, %arg4: memref<1x128xf32, #tpu.memory_space<vmem>>, %arg5: memref<128x10xf32, #tpu.memory_space<vmem>>, %arg6: memref<1x10xf32, #tpu.memory_space<vmem>>, %arg7: memref<2x10xf32, #tpu.memory_space<vmem>>, %arg8: memref<2x102x128xf32, #tpu.memory_space<vmem>>) attributes {dimension_semantics = [#tpu.dimension_semantics<parallel>, #tpu.dimension_semantics<arbitrary>], iteration_bounds = array<i64: 1, 1>, scalar_prefetch = 0 : i64, scratch_operands = 1 : i64, tpu.core_type = #tpu.core_type<tc>, window_params = [{transform_indices = @transform_0, window_bounds = array<i64: 2, 102, 256>}, {pipeline_mode = #tpu.pipeline_mode<synchronous>, transform_indices = @transform_1, window_bounds = array<i64: 102, 128>}, {pipeline_mode = #tpu.pipeline_mode<synchronous>, transform_indices = @transform_2, window_bounds = array<i64: 1, 128>}, {pipeline_mode = #tpu.pipeline_mode<synchronous>, transform_indices = @transform_3, window_bounds = array<i64: 128, 10>}, {pipeline_mode = #tpu.pipeline_mode<synchronous>, transform_indices = @transform_4, window_bounds = array<i64: 1, 10>}, {transform_indices = @transform_5, window_bounds = array<i64: 2, 10>}]} {
    %c0_i32 = arith.constant 0 : i32
    %0 = arith.cmpi eq, %arg1, %c0_i32 : i32
    %1 = arith.extui %0 : i1 to i32
    %c0_i32_0 = arith.constant 0 : i32
    %2 = arith.cmpi ne, %1, %c0_i32_0 : i32
    scf.if %2 {
      %cst = arith.constant 0.000000e+00 : f32
      %14 = vector.broadcast %cst : f32 to vector<2x102x128xf32>
      %c0_19 = arith.constant 0 : index
      %c0_20 = arith.constant 0 : index
      %c0_21 = arith.constant 0 : index
      %15 = vector.load %arg8[%c0_19, %c0_20, %c0_21] : memref<2x102x128xf32, #tpu.memory_space<vmem>>, vector<2x102x128xf32>
      tpu.vector_store %arg8[%c0_19, %c0_20, %c0_21], %14 {strides = array<i32>} : memref<2x102x128xf32, #tpu.memory_space<vmem>>, vector<2x102x128xf32>,
    } else {
    }
    %c0 = arith.constant 0 : index
    %c0_1 = arith.constant 0 : index
    %c0_2 = arith.constant 0 : index
    %3 = vector.load %arg8[%c0, %c0_1, %c0_2] : memref<2x102x128xf32, #tpu.memory_space<vmem>>, vector<2x102x128xf32>
    %c0_3 = arith.constant 0 : index
    %c0_4 = arith.constant 0 : index
    %c0_5 = arith.constant 0 : index
    %4 = vector.load %arg2[%c0_3, %c0_4, %c0_5] : memref<2x102x256xf32, #tpu.memory_space<vmem>>, vector<2x102x128xf32>
    %5 = arith.addf %3, %4 : vector<2x102x128xf32>
    %c0_6 = arith.constant 0 : index
    %c0_7 = arith.constant 0 : index
    %c0_8 = arith.constant 0 : index
    %6 = vector.load %arg8[%c0_6, %c0_7, %c0_8] : memref<2x102x128xf32, #tpu.memory_space<vmem>>, vector<2x102x128xf32>
    tpu.vector_store %arg8[%c0_6, %c0_7, %c0_8], %5 {strides = array<i32>} : memref<2x102x128xf32, #tpu.memory_space<vmem>>, vector<2x102x128xf32>,
    %c0_9 = arith.constant 0 : index
    %c0_10 = arith.constant 0 : index
    %c0_11 = arith.constant 0 : index
    %7 = vector.load %arg8[%c0_9, %c0_10, %c0_11] : memref<2x102x128xf32, #tpu.memory_space<vmem>>, vector<2x102x128xf32>
    %c0_12 = arith.constant 0 : index
    %c0_13 = arith.constant 0 : index
    %c128 = arith.constant 128 : index
    %8 = vector.load %arg2[%c0_12, %c0_13, %c128] : memref<2x102x256xf32, #tpu.memory_space<vmem>>, vector<2x102x128xf32>
    %9 = arith.addf %7, %8 : vector<2x102x128xf32>
    %c0_14 = arith.constant 0 : index
    %c0_15 = arith.constant 0 : index
    %c0_16 = arith.constant 0 : index
    %10 = vector.load %arg8[%c0_14, %c0_15, %c0_16] : memref<2x102x128xf32, #tpu.memory_space<vmem>>, vector<2x102x128xf32>
    tpu.vector_store %arg8[%c0_14, %c0_15, %c0_16], %9 {strides = array<i32>} : memref<2x102x128xf32, #tpu.memory_space<vmem>>, vector<2x102x128xf32>,
    %c0_i32_17 = arith.constant 0 : i32
    %11 = arith.cmpi eq, %arg1, %c0_i32_17 : i32
    %12 = arith.extui %11 : i1 to i32
    %c0_i32_18 = arith.constant 0 : i32
    %13 = arith.cmpi ne, %12, %c0_i32_18 : i32
    scf.if %13 {
      %c0_19 = arith.constant 0 : index
      %c0_20 = arith.constant 0 : index
      %c0_21 = arith.constant 0 : index
      %14 = vector.load %arg8[%c0_19, %c0_20, %c0_21] : memref<2x102x128xf32, #tpu.memory_space<vmem>>, vector<2x102x128xf32>
      %cst = arith.constant dense<0.000000e+00> : vector<2x102xf32>
      %15 = vector.multi_reduction <add>, %14, %cst [2] : vector<2x102x128xf32> to vector<2x102xf32>
      %cst_22 = arith.constant 0.00130208337 : f32
      %16 = vector.broadcast %cst_22 : f32 to vector<2x102xf32>
      %17 = arith.mulf %15, %16 : vector<2x102xf32>
      %c0_23 = arith.constant 0 : index
      %c0_24 = arith.constant 0 : index
      %18 = vector.load %arg3[%c0_23, %c0_24] : memref<102x128xf32, #tpu.memory_space<vmem>>, vector<102x128xf32>
      %cst_25 = arith.constant dense<0.000000e+00> : vector<2x128xf32>
      %19 = tpu.matmul %17, %18, %cst_25 {dimension_numbers = #tpu.dot_dimension_numbers<[1], [0], [0], [1], [0, 0, 1, 1], [], []>} : vector<2x102xf32>, vector<102x128xf32>, vector<2x128xf32> -> vector<2x128xf32>
      %c0_26 = arith.constant 0 : index
      %c0_27 = arith.constant 0 : index
      %20 = vector.load %arg4[%c0_26, %c0_27] : memref<1x128xf32, #tpu.memory_space<vmem>>, vector<1x128xf32>
      %21 = vector.broadcast %20 : vector<1x128xf32> to vector<2x128xf32>
      %22 = arith.addf %19, %21 : vector<2x128xf32>
      %cst_28 = arith.constant 0.000000e+00 : f32
      %23 = vector.broadcast %cst_28 : f32 to vector<2x128xf32>
      %24 = arith.maximumf %22, %23 : vector<2x128xf32>
      %c0_29 = arith.constant 0 : index
      %c0_30 = arith.constant 0 : index
      %25 = vector.load %arg5[%c0_29, %c0_30] : memref<128x10xf32, #tpu.memory_space<vmem>>, vector<128x10xf32>
      %cst_31 = arith.constant dense<0.000000e+00> : vector<2x10xf32>
      %26 = tpu.matmul %24, %25, %cst_31 {dimension_numbers = #tpu.dot_dimension_numbers<[1], [0], [0], [1], [0, 0, 1, 1], [], []>} : vector<2x128xf32>, vector<128x10xf32>, vector<2x10xf32> -> vector<2x10xf32>
      %c0_32 = arith.constant 0 : index
      %c0_33 = arith.constant 0 : index
      %27 = vector.load %arg6[%c0_32, %c0_33] : memref<1x10xf32, #tpu.memory_space<vmem>>, vector<1x10xf32>
      %28 = vector.broadcast %27 : vector<1x10xf32> to vector<2x10xf32>
      %29 = arith.addf %26, %28 : vector<2x10xf32>
      %c0_34 = arith.constant 0 : index
      %c0_35 = arith.constant 0 : index
      %30 = vector.load %arg7[%c0_34, %c0_35] : memref<2x10xf32, #tpu.memory_space<vmem>>, vector<2x10xf32>
      tpu.vector_store %arg7[%c0_34, %c0_35], %29 {strides = array<i32>} : memref<2x10xf32, #tpu.memory_space<vmem>>, vector<2x10xf32>,
    } else {
    }
    return
  }
  func.func @transform_0(%arg0: i32, %arg1: i32) -> (i32, i32, i32) {
    %c0_i32 = arith.constant 0 : i32
    %c0_i32_0 = arith.constant 0 : i32
    return %arg0, %c0_i32, %arg1 : i32, i32, i32
  }
  func.func @transform_1(%arg0: i32, %arg1: i32) -> (i32, i32) {
    %c0_i32 = arith.constant 0 : i32
    %c0_i32_0 = arith.constant 0 : i32
    %c0_i32_1 = arith.constant 0 : i32
    return %c0_i32, %c0_i32_0 : i32, i32
  }
  func.func @transform_2(%arg0: i32, %arg1: i32) -> (i32, i32) {
    %c0_i32 = arith.constant 0 : i32
    %c0_i32_0 = arith.constant 0 : i32
    %c0_i32_1 = arith.constant 0 : i32
    return %c0_i32, %c0_i32_0 : i32, i32
  }
  func.func @transform_3(%arg0: i32, %arg1: i32) -> (i32, i32) {
    %c0_i32 = arith.constant 0 : i32
    %c0_i32_0 = arith.constant 0 : i32
    %c0_i32_1 = arith.constant 0 : i32
    return %c0_i32, %c0_i32_0 : i32, i32
  }
  func.func @transform_4(%arg0: i32, %arg1: i32) -> (i32, i32) {
    %c0_i32 = arith.constant 0 : i32
    %c0_i32_0 = arith.constant 0 : i32
    %c0_i32_1 = arith.constant 0 : i32
    return %c0_i32, %c0_i32_0 : i32, i32
  }
  func.func @transform_5(%arg0: i32, %arg1: i32) -> (i32, i32) {
    %c0_i32 = arith.constant 0 : i32
    %c0_i32_0 = arith.constant 0 : i32
    return %arg0, %c0_i32 : i32, i32
  }
}

</mosaic_0001>

<bundles_post_ra>
// kernel: tpu_custom_call.1
= control target key start
LH: loop header
LB: loop body
LE: loop exit
PB: predicated region body
PF: predicated region fallthrough
CT: control target
= control target key end

     0   :  { %v926_v3 = vmov 0.0   ;;  %s1317_s0 = inlined_call_operand.vmem [shape: f32[2,102,256], index: 0, kind: input, shape index: {}]   ;;  %s1318_s1 = inlined_call_operand.vmem [shape: f32[102,128], index: 1, kind: input, shape index: {}]   ;;  %s1319_s2 = inlined_call_operand.vmem [shape: f32[1,128], index: 2, kind: input, shape index: {}]   ;;  %s1320_s3 = inlined_call_operand.vmem [shape: f32[128,10], index: 3, kind: input, shape index: {}]   ;;  %s1321_s4 = inlined_call_operand.vmem [shape: f32[1,10], index: 4, kind: input, shape index: {}]   ;;  %s1322_s5 = inlined_call_operand.hbm [shape: f32[2,10], index: 5, kind: output, shape index: {}]  }
   0x1   :  { %v90_v0 = vld [vmem:[%s1317_s0 + $0xd0] sm:$0xff]  ;;  %v194_v1 = vld [vmem:[%s1317_s0 + $0xd8] sm:$0xff]  ;;  %v77_v2 = vld [vmem:[%s1317_s0] sm:$0xff]  ;;  %37 = vst [vmem:[#allocation2 + $0x60] sm:$0x3f] %v926_v3 }
   0x2   :  { %50 = vst [vmem:[#allocation2 + $0xc8] sm:$0x3f] %v926_v3  ;;  %v181_v4 = vld [vmem:[%s1317_s0 + $0x8] sm:$0xff]  ;;  %v91_v5 = vld [vmem:[%s1317_s0 + $0xe0] sm:$0xff]  ;;  %v78_v7 = vld [vmem:[%s1317_s0 + $0x10] sm:$0xff]  ;;  %v220_v10 = vadd.f32 %v194_v1, %v90_v0 }
   0x3   :  { %v195_v6 = vld [vmem:[%s1317_s0 + $0xe8] sm:$0xff]  ;;  %v182_v8 = vld [vmem:[%s1317_s0 + $0x18] sm:$0xff]  ;;  %v92_v9 = vld [vmem:[%s1317_s0 + $0xf0] sm:$0xff]  ;;  %v207_v11 = vadd.f32 %v181_v4, %v77_v2 }
   0x4   :  { %v196_v12 = vld [vmem:[%s1317_s0 + $0xf8] sm:$0xff]  ;;  %v79_v13 = vld [vmem:[%s1317_s0 + $0x20] sm:$0xff]  ;;  %v183_v14 = vld [vmem:[%s1317_s0 + $0x28] sm:$0xff]  ;;  %v221_v15 = vadd.f32 %v195_v6, %v91_v5  ;;  %316 = vadd.xlane.f32.xlu1 %v220_v10  ;;  %v208_v19 = vadd.f32 %v182_v8, %v78_v7 }
   0x5   :  { %v93_v16 = vld [vmem:[%s1317_s0 + $0x100] sm:$0xff]  ;;  %v197_v17 = vld [vmem:[%s1317_s0 + $0x108] sm:$0xff]  ;;  %v80_v18 = vld [vmem:[%s1317_s0 + $0x30] sm:$0xff]  ;;  %288 = vadd.xlane.f32.xlu0 %v207_v11  ;;  %v222_v20 = vadd.f32 %v196_v12, %v92_v9  ;;  %v209_v24 = vadd.f32 %v183_v14, %v79_v13 }
   0x6   :  { %v184_v21 = vld [vmem:[%s1317_s0 + $0x38] sm:$0xff]  ;;  %v94_v22 = vld [vmem:[%s1317_s0 + $0x110] sm:$0xff]  ;;  %v81_v25 = vld [vmem:[%s1317_s0 + $0x40] sm:$0xff]  ;;  %v223_v28 = vadd.f32 %v197_v17, %v93_v16 }
   0x7   :  { %v198_v23 = vld [vmem:[%s1317_s0 + $0x118] sm:$0xff]  ;;  %v185_v26 = vld [vmem:[%s1317_s0 + $0x48] sm:$0xff]  ;;  %v95_v27 = vld [vmem:[%s1317_s0 + $0x120] sm:$0xff]  ;;  %v210_v32 = vadd.f32 %v184_v21, %v80_v18 }
   0x8   :  { %v199_v29 = vld [vmem:[%s1317_s0 + $0x128] sm:$0xff]  ;;  %v82_v30 = vld [vmem:[%s1317_s0 + $0x50] sm:$0xff]  ;;  %v186_v31 = vld [vmem:[%s1317_s0 + $0x58] sm:$0xff]  ;;  %v224_v33 = vadd.f32 %v198_v23, %v94_v22  ;;  %318 = vadd.xlane.f32.xlu1 %v221_v15  ;;  %v211_v37 = vadd.f32 %v185_v26, %v81_v25 }
   0x9   :  { %v96_v34 = vld [vmem:[%s1317_s0 + $0x130] sm:$0xff]  ;;  %v200_v35 = vld [vmem:[%s1317_s0 + $0x138] sm:$0xff]  ;;  %v83_v36 = vld [vmem:[%s1317_s0 + $0x60] sm:$0xff]  ;;  %290 = vadd.xlane.f32.xlu0 %v208_v19  ;;  %v225_v38 = vadd.f32 %v199_v29, %v95_v27  ;;  %v212_v42 = vadd.f32 %v186_v31, %v82_v30 }
   0xa   :  { %v187_v39 = vld [vmem:[%s1317_s0 + $0x68] sm:$0xff]  ;;  %v97_v40 = vld [vmem:[%s1317_s0 + $0x140] sm:$0xff]  ;;  %v84_v43 = vld [vmem:[%s1317_s0 + $0x70] sm:$0xff]  ;;  %v226_v46 = vadd.f32 %v200_v35, %v96_v34 }
   0xb   :  { %v201_v41 = vld [vmem:[%s1317_s0 + $0x148] sm:$0xff]  ;;  %v188_v44 = vld [vmem:[%s1317_s0 + $0x78] sm:$0xff]  ;;  %v98_v45 = vld [vmem:[%s1317_s0 + $0x150] sm:$0xff]  ;;  %v213_v50 = vadd.f32 %v187_v39, %v83_v36 }
   0xc   :  { %v202_v47 = vld [vmem:[%s1317_s0 + $0x158] sm:$0xff]  ;;  %v85_v48 = vld [vmem:[%s1317_s0 + $0x80] sm:$0xff]  ;;  %v189_v49 = vld [vmem:[%s1317_s0 + $0x88] sm:$0xff]  ;;  %v227_v51 = vadd.f32 %v201_v41, %v97_v40  ;;  %320 = vadd.xlane.f32.xlu1 %v222_v20  ;;  %v214_v55 = vadd.f32 %v188_v44, %v84_v43 }
   0xd   :  { %v99_v52 = vld [vmem:[%s1317_s0 + $0x160] sm:$0xff]  ;;  %v203_v53 = vld [vmem:[%s1317_s0 + $0x168] sm:$0xff]  ;;  %v86_v54 = vld [vmem:[%s1317_s0 + $0x90] sm:$0xff]  ;;  %292 = vadd.xlane.f32.xlu0 %v209_v24  ;;  %v228_v56 = vadd.f32 %v202_v47, %v98_v45  ;;  %v215_v60 = vadd.f32 %v189_v49, %v85_v48 }
   0xe   :  { %v190_v57 = vld [vmem:[%s1317_s0 + $0x98] sm:$0xff]  ;;  %v100_v58 = vld [vmem:[%s1317_s0 + $0x170] sm:$0xff]  ;;  %v87_v61 = vld [vmem:[%s1317_s0 + $0xa0] sm:$0xff]  ;;  %v229_v0 = vadd.f32 %v203_v53, %v99_v52 }
   0xf   :  { %v204_v59 = vld [vmem:[%s1317_s0 + $0x178] sm:$0xff]  ;;  %v191_v62 = vld [vmem:[%s1317_s0 + $0xa8] sm:$0xff]  ;;  %v101_v63 = vld [vmem:[%s1317_s0 + $0x180] sm:$0xff]  ;;  %v216_v5 = vadd.f32 %v190_v57, %v86_v54 }
  0x10   :  { %v205_v1 = vld [vmem:[%s1317_s0 + $0x188] sm:$0xff]  ;;  %v88_v2 = vld [vmem:[%s1317_s0 + $0xb0] sm:$0xff]  ;;  %v192_v4 = vld [vmem:[%s1317_s0 + $0xb8] sm:$0xff]  ;;  %v230_v6 = vadd.f32 %v204_v59, %v100_v58  ;;  %322 = vadd.xlane.f32.xlu1 %v223_v28  ;;  %v217_v9 = vadd.f32 %v191_v62, %v87_v61 }
  0x11   :  { %v76_v7 = vld [vmem:[#allocation2 + $0xc8] sm:$0x3f]  ;;  %v102_v8 = vld [vmem:[%s1317_s0 + $0x190] sm:$0x3f]  ;;  %294 = vadd.xlane.f32.xlu0 %v210_v32  ;;  %v231_v10 = vadd.f32 %v205_v1, %v101_v63  ;;  %v63_v12 = vld [vmem:[#allocation2 + $0x60] sm:$0x3f]  ;;  %v218_v14 = vadd.f32 %v192_v4, %v88_v2 }
  0x12   :  { %v128_v11 = vadd.f32 %v102_v8, %v76_v7  ;;  %v89_v13 = vld [vmem:[%s1317_s0 + $0xc0] sm:$0x3f] }
  0x13   :  { %v115_v15 = vadd.f32 %v89_v13, %v63_v12 }
  0x14   :  { %10 = vsyncpa [#allocation4], 0  ;;  %154 = vst [vmem:[#allocation2 + $0xc8] sm:$0x3f] %v128_v11  ;;  %324 = vadd.xlane.f32.xlu1 %v224_v33  ;;  %v206_v16 = vld [vmem:[%s1317_s0 + $0x198] sm:$0x3f]  ;;  %v415_v13 = vlaneseq }
  0x15   :  { %141 = vst [vmem:[#allocation2 + $0x60] sm:$0x3f] %v115_v15  ;;  %296 = vadd.xlane.f32.xlu0 %v211_v37  ;;  %v193_v17 = vld [vmem:[%s1317_s0 + $0xc8] sm:$0x3f]  ;;  %v369_v22 = vld [vmem:[%s1318_s1] sm:$0xff]  ;;  %vm312_vm0 = vcmask 1045504  }
  0x16   :  { %v370_v23 = vld [vmem:[%s1318_s1 + $0x8] sm:$0xff]  ;;  %v927_v27 = vmov 0.0|0.0   ;;  %v371_v28 = vld [vmem:[%s1318_s1 + $0x10] sm:$0xff]  ;;  %v372_v29 = vld [vmem:[%s1318_s1 + $0x18] sm:$0xff]  ;;  %vm928_vm1 = vmmov 0   ;;  %vm426_vm2 = vcmask 130112  }
  0x17   :  { %v857_v24 = vpack.c.bf16 %v370_v23, %v369_v22  ;;  %856 = vmatprep.subr.bf16.mxu0 %v927_v27  ;;  %874 = vmatprep.subr.bf16.mxu1 %v927_v27  ;;  %v860_v32 = vpack.c.bf16 %v372_v29, %v371_v28  ;;  %v373_v33 = vld [vmem:[%s1318_s1 + $0x20] sm:$0xff]  ;;  %v374_v34 = vld [vmem:[%s1318_s1 + $0x28] sm:$0xff]  ;;  %v375_v36 = vld [vmem:[%s1318_s1 + $0x30] sm:$0xff]  ;;  %vm433_vm3 = vcmask 195712   ;;  %vm440_vm4 = vcmask 261312   ;;  %s929_s29 = smov [#allocation3]  }
  0x18   :  { %326 = vadd.xlane.f32.xlu1 %v225_v38  ;;  %v863_v35 = vpack.c.bf16 %v374_v34, %v373_v33  ;;  %v376_v37 = vld [vmem:[%s1318_s1 + $0x38] sm:$0xff]  ;;  %v377_v39 = vld [vmem:[%s1318_s1 + $0x40] sm:$0xff]  ;;  %v378_v40 = vld [vmem:[%s1318_s1 + $0x48] sm:$0xff]  ;;  %818 = vmatprep.mubr.msk.f32.mxu0 %vm928_vm1, %v926_v3  ;;  %vm447_vm5 = vcmask 326912   ;;  %vm454_vm6 = vcmask 392512   ;;  %vm461_vm7 = vcmask 458112  }
  0x19   :  { %298 = vadd.xlane.f32.xlu0 %v212_v42  ;;  %858 = vmatpush3.bf16.msra.mxu0 %v857_v24  ;;  %v866_v38 = vpack.c.bf16 %v376_v37, %v375_v36  ;;  %v869_v41 = vpack.c.bf16 %v378_v40, %v377_v39  ;;  %v379_v42 = vld [vmem:[%s1318_s1 + $0x50] sm:$0xff]  ;;  %v380_v43 = vld [vmem:[%s1318_s1 + $0x58] sm:$0xff]  ;;  %v381_v45 = vld [vmem:[%s1318_s1 + $0x60] sm:$0x3f]  ;;  %vm468_vm8 = vcmask 523712   ;;  %vm475_vm9 = vcmask 589312  }
  0x1a   :  { %859 = vmatprep.subr.bf16.mxu0 %v927_v27  ;;  %v872_v44 = vpack.c.bf16 %v380_v43, %v379_v42  ;;  %853 = vmatprep.mubr.msk.f32.mxu1 %vm928_vm1, %v926_v3  ;;  %v649_v47 = vld [vmem:[%s1320_s3 + $0x8] sm:$0xff]  ;;  %v650_v48 = vld [vmem:[%s1320_s3 + $0x10] sm:$0xff]  ;;  %v656_v57 = vld [vmem:[%s1320_s3 + $0x40] sm:$0xff]  ;;  %vm482_vm10 = vcmask 654912   ;;  %vm489_vm11 = vcmask 720512   ;;  %vm496_vm12 = vcmask 786112  }
  0x1b   :  { %v180_v18 = vld [vmem:[#allocation2 + $0xc8] sm:$0x3f]  ;;  %v654_v54 = vld [vmem:[%s1320_s3 + $0x30] sm:$0xff]  ;;  %v659_v61 = vld [vmem:[%s1320_s3 + $0x58] sm:$0xff]  ;;  %vm503_vm13 = vcmask 851712   ;;  %vm569_vm14 = vcmask 1041409  }
  0x1c   :  { %v232_v19 = vadd.f32 %v206_v16, %v180_v18  ;;  %v167_v20 = vld [vmem:[#allocation2 + $0x60] sm:$0x3f]  ;;  %328 = vadd.xlane.f32.xlu1 %v226_v46  ;;  %v653_v52 = vld [vmem:[%s1320_s3 + $0x28] sm:$0xff]  ;;  %v416_v16 = vand.u32 127, %v415_v13  ;;  %vm571_vm15 = vcmask 834560   ;;  %s749_s30 = sshll.u32 %s929_s29, 4  ;;  %s750_s30 = int_to_ptr.vmem [resolvable:$true] %s749_s30 }
  0x1d   :  { %v219_v21 = vadd.f32 %v193_v17, %v167_v20  ;;  %300 = vadd.xlane.f32.xlu0 %v213_v50  ;;  %861 = vmatpush3.bf16.msra.mxu0 %v860_v32  ;;  %v648_v46 = vld [vmem:[%s1320_s3] sm:$0xff]  ;;  %v651_v50 = vld [vmem:[%s1320_s3 + $0x18] sm:$0xff]  ;;  %v657_v58 = vld [vmem:[%s1320_s3 + $0x48] sm:$0xff]  ;;  %v418_v17 = vshrl.u32 %v415_v13, 7  ;;  %p907_p1 = scmp.lt.s32.totalorder %s750_s30, %s750_s30 }
  0x1e   :  { %258 = vst [vmem:[#allocation2 + $0xc8] sm:$0x3f] %v232_v19  ;;  %862 = vmatprep.subr.bf16.mxu0 %v927_v27  ;;  %v875_v49 = vpack.c.bf16 %v649_v47, %v648_v46  ;;  %v887_v59 = vpack.c.bf16 %v657_v58, %v656_v57  ;;  %v660_v63 = vld [vmem:[%s1320_s3 + $0x60] sm:$0xff]  ;;  %v421_v18 = vadd.s32 4294967288, %v416_v16  ;;  %v435_v22 = vadd.s32 4294967272, %v416_v16 }
  0x1f   :  { %245 = vst [vmem:[#allocation2 + $0x60] sm:$0x3f] %v219_v21  ;;  %v428_v21 = vadd.s32 4294967280, %v416_v16  ;;  %v442_v23 = vadd.s32 4294967264, %v416_v16  ;;  %v419_v24 = vsub.s32 %v416_v16, %v418_v17  ;;  %v470_v36 = vadd.s32 4294967232, %v416_v16 }
  0x20   :  { %330 = vadd.xlane.f32.xlu1 %v227_v51  ;;  %876 = vmatpush3.bf16.msra.mxu1 %v875_v49  ;;  %v652_v51 = vld [vmem:[%s1320_s3 + $0x20] sm:$0xff]  ;;  %v477_v39 = vadd.s32 4294967224, %v416_v16  ;;  %v484_v40 = vadd.s32 4294967216, %v416_v16  ;;  %v491_v49 = vadd.s32 4294967208, %v416_v16 }
  0x21   :  { %302 = vadd.xlane.f32.xlu0 %v214_v55  ;;  %864 = vmatpush3.bf16.msra.mxu0 %v863_v35  ;;  %v881_v53 = vpack.c.bf16 %v653_v52, %v652_v51  ;;  %v655_v55 = vld [vmem:[%s1320_s3 + $0x38] sm:$0xff]  ;;  %v1229_v32 = vsub.s32 %v442_v23, %v418_v17  ;;  %v463_v35 = vadd.s32 4294967240, %v416_v16 }
  0x22   :  { %865 = vmatprep.subr.bf16.mxu0 %v927_v27  ;;  %877 = vmatprep.subr.bf16.mxu1 %v927_v27  ;;  %v1241_v57 = vsub.s32 %v484_v40, %v418_v17 }
  0x23   :  { %v1235_v52 = vsub.s32 %v463_v35, %v418_v17 }
  0x24   :  { %332 = vadd.xlane.f32.xlu1 %v228_v56  ;;  %v884_v56 = vpack.c.bf16 %v655_v55, %v654_v54 }
  0x25   :  { %304 = vadd.xlane.f32.xlu0 %v215_v60  ;;  %v287_v25 = vld [vmem:[#allocation2 + $0xc8] sm:$0x3f]  ;;  %867 = vmatpush3.bf16.msra.mxu0 %v866_v38  ;;  %v658_v60 = vld [vmem:[%s1320_s3 + $0x50] sm:$0xff] }
  0x26   :  { %v274_v26 = vld [vmem:[#allocation2 + $0x60] sm:$0x3f]  ;;  %v340_v30 = vsel %vm312_vm0, %v287_v25, 0.0  ;;  %868 = vmatprep.subr.bf16.mxu0 %v927_v27  ;;  %v890_v62 = vpack.c.bf16 %v659_v61, %v658_v60  ;;  %v424_v25 = vsub.s32 %v421_v18, %v418_v17 }
  0x27   :  { %v313_v31 = vsel %vm312_vm0, %v274_v26, 0.0  ;;  %v449_v26 = vadd.s32 4294967256, %v416_v16 }
  0x28   :  { %334 = vadd.xlane.f32.xlu1 %v229_v0  ;;  %v661_v0 = vld [vmem:[%s1320_s3 + $0x68] sm:$0xff] }
  0x29   :  { %306 = vadd.xlane.f32.xlu0 %v216_v5  ;;  %870 = vmatpush3.bf16.msra.mxu0 %v869_v41  ;;  %v893_v1 = vpack.c.bf16 %v661_v0, %v660_v63  ;;  %v1231_v43 = vsub.s32 %v449_v26, %v418_v17 }
  0x2a   :  { %871 = vmatprep.subr.bf16.mxu0 %v927_v27 }
  0x2c   :  { %336 = vadd.xlane.f32.xlu1 %v230_v6 }
  0x2d   :  { %308 = vadd.xlane.f32.xlu0 %v217_v9  ;;  %873 = vmatpush3.bf16.msra.mxu0 %v872_v44 }
  0x2e   :  { %816 = vmatprep.subr.mxu0 %v926_v3  ;;  %v878_v3 = vpack.c.bf16 %v651_v50, %v650_v48  ;;  %v498_v50 = vadd.s32 4294967200, %v416_v16 }
  0x30   :  { %338 = vadd.xlane.f32.xlu1 %v231_v10  ;;  %879 = vmatpush3.bf16.msra.mxu1 %v878_v3 }
  0x31   :  { %310 = vadd.xlane.f32.xlu0 %v218_v14  ;;  %817 = vmatpush3.msk.msra.mxu0 %vm312_vm0, %v381_v45  ;;  %vm741_vm0 = vcmask 74752  }
  0x32   :  { %880 = vmatprep.subr.bf16.mxu1 %v927_v27 }
  0x34   :  { %341 = vadd.xlane.f32.xlu1 %v340_v30  ;;  %882 = vmatpush3.bf16.msra.mxu1 %v881_v53  ;;  %v431_v30 = vsub.s32 %v428_v21, %v418_v17  ;;  %v1237_v53 = vsub.s32 %v470_v36, %v418_v17 }
  0x35   :  { %314 = vadd.xlane.f32.xlu0 %v313_v31  ;;  %883 = vmatprep.subr.bf16.mxu1 %v927_v27  ;;  %v1227_v31 = vsub.s32 %v435_v22, %v418_v17 }
  0x38   :  { %885 = vmatpush3.bf16.msra.mxu1 %v884_v56  ;;  %v1239_v56 = vsub.s32 %v477_v39, %v418_v17 }
  0x39   :  { %886 = vmatprep.subr.bf16.mxu1 %v927_v27 }
  0x3c   :  { %888 = vmatpush3.bf16.msra.mxu1 %v887_v59 }
  0x3d   :  { %889 = vmatprep.subr.bf16.mxu1 %v927_v27 }
  0x40   :  { %891 = vmatpush3.bf16.msra.mxu1 %v890_v62 }
  0x41   :  { %892 = vmatprep.subr.bf16.mxu1 %v927_v27 }
  0x44   :  { %894 = vmatpush3.bf16.msra.mxu1 %v893_v1 }
  0x45   :  { %895 = vmatprep.subr.bf16.mxu1 %v927_v27  ;;  %v456_v27 = vadd.s32 4294967248, %v416_v16 }
  0x47   :  { %v1233_v44 = vsub.s32 %v456_v27, %v418_v17 }
  0x91   :  { %v317_v2 = vpop.xlane.xlu1 %316 }
  0x92   :  { %v289_v4 = vpop.xlane.xlu0 %288  ;;  %v356_v41 = vmul.f32 0.0013020834, %v317_v2  ;;  %v1245_v2 = vsub.s32 %v491_v49, %v418_v17 }
  0x93   :  { %v343_v42 = vmul.f32 0.0013020834, %v289_v4  ;;  %v1247_v4 = vsub.s32 %v498_v50, %v418_v17 }
  0x94   :  { %v508_v58 = vrot.slane %v356_v41, %v419_v24 }
  0x95   :  { %v319_v5 = vpop.xlane.xlu1 %318  ;;  %v420_v59 = vrot.slane %v343_v42, %v419_v24 }
  0x96   :  { %v291_v6 = vpop.xlane.xlu0 %290  ;;  %v357_v33 = vmul.f32 0.0013020834, %v319_v5 }
  0x97   :  { %v344_v34 = vmul.f32 0.0013020834, %v291_v6 }
  0x98   :  { %v512_v3 = vrot.slane %v357_v33, %v424_v25 }
  0x99   :  { %v321_v7 = vpop.xlane.xlu1 %320  ;;  %v425_v51 = vrot.slane %v344_v34, %v424_v25 }
  0x9a   :  { %v293_v8 = vpop.xlane.xlu0 %292  ;;  %v358_v37 = vmul.f32 0.0013020834, %v321_v7  ;;  %v513_v5 = vsel %vm426_vm2, %v512_v3, %v508_v58 }
  0x9b   :  { %v345_v38 = vmul.f32 0.0013020834, %v293_v8  ;;  %v427_v6 = vsel %vm426_vm2, %v425_v51, %v420_v59 }
  0x9c   :  { %v517_v54 = vrot.slane %v358_v37, %v431_v30 }
  0x9d   :  { %v323_v9 = vpop.xlane.xlu1 %322  ;;  %v432_v55 = vrot.slane %v345_v38, %v431_v30 }
  0x9e   :  { %v295_v10 = vpop.xlane.xlu0 %294  ;;  %v359_v47 = vmul.f32 0.0013020834, %v323_v9  ;;  %v518_v9 = vsel %vm433_vm3, %v517_v54, %v513_v5 }
  0x9f   :  { %v346_v48 = vmul.f32 0.0013020834, %v295_v10  ;;  %v434_v10 = vsel %vm433_vm3, %v432_v55, %v427_v6 }
  0xa0   :  { %v522_v0 = vrot.slane %v359_v47, %v1227_v31 }
  0xa1   :  { %v325_v11 = vpop.xlane.xlu1 %324  ;;  %v439_v1 = vrot.slane %v346_v48, %v1227_v31 }
  0xa2   :  { %v297_v12 = vpop.xlane.xlu0 %296  ;;  %v360_v60 = vmul.f32 0.0013020834, %v325_v11 }
  0xa3   :  { %v347_v61 = vmul.f32 0.0013020834, %v297_v12  ;;  %v441_v22 = vsel %vm440_vm4, %v439_v1, %v434_v10 }
  0xa4   :  { %v527_v13 = vrot.slane %v360_v60, %v1229_v32 }
  0xa5   :  { %v1219_v14 = vpop.xlane.xlu1 %326  ;;  %v446_v16 = vrot.slane %v347_v61, %v1229_v32 }
  0xa6   :  { %v1221_v15 = vpop.xlane.xlu0 %298  ;;  %v361_v7 = vmul.f32 0.0013020834, %v1219_v14 }
  0xa7   :  { %v348_v8 = vmul.f32 0.0013020834, %v1221_v15  ;;  %v523_v15 = vsel %vm440_vm4, %v522_v0, %v518_v9  ;;  %v448_v32 = vsel %vm447_vm5, %v446_v16, %v441_v22  ;;  %v760_v16 = vld [vmem:[%s1321_s4] ss:$0 sm:$0xff] }
  0xa8   :  { %v528_v31 = vsel %vm447_vm5, %v527_v13, %v523_v15 }
  0xa9   :  { %v1223_v19 = vpop.xlane.xlu1 %328 }
  0xaa   :  { %v1225_v20 = vpop.xlane.xlu0 %300  ;;  %v362_v11 = vmul.f32 0.0013020834, %v1223_v19  ;;  %v532_v19 = vrot.slane %v361_v7, %v1231_v43  ;;  %v662_v7 = vld [vmem:[%s1320_s3 + $0x70] sm:$0xff] }
  0xab   :  { %v349_v12 = vmul.f32 0.0013020834, %v1225_v20  ;;  %v453_v20 = vrot.slane %v348_v8, %v1231_v43  ;;  %v663_v8 = vld [vmem:[%s1320_s3 + $0x78] sm:$0xff]  ;;  %s902_s3 = scalar_lea.vmem %s750_s30, 32 }
  0xac   :  { %v537_v27 = vrot.slane %v362_v11, %v1233_v44  ;;  %v533_v41 = vsel %vm454_vm6, %v532_v19, %v528_v31  ;;  %v896_v9 = vpack.c.bf16 %v663_v8, %v662_v7  ;;  %p903_p0 = scmp.ne.s32.totalorder %s750_s30, %s902_s3  ;;  %p908_p2 = scmp.lt.s32.totalorder %s902_s3, %s902_s3 }
  0xad   :  { %v331_v28 = vpop.xlane.xlu1 %330  ;;  %v455_v42 = vsel %vm454_vm6, %v453_v20, %v448_v32 }
  0xae   :  { %v303_v29 = vpop.xlane.xlu0 %302  ;;  %v363_v17 = vmul.f32 0.0013020834, %v331_v28  ;;  %v460_v28 = vrot.slane %v349_v12, %v1233_v44  ;;  %897 = vmatpush3.bf16.msra.mxu1 %v896_v9  ;;  %p909_p3 = por %p908_p2, %p907_p1 }
  0xaf   :  { %v350_v18 = vmul.f32 0.0013020834, %v303_v29 }
  0xb0   :  { %v542_v33 = vrot.slane %v363_v17, %v1235_v52  ;;  %p910_p4 = pnand %p909_p3, %p903_p0 }
  0xb1   :  { %v333_v45 = vpop.xlane.xlu1 %332  ;;  %v467_v34 = vrot.slane %v350_v18, %v1235_v52 }
  0xb2   :  { %v305_v46 = vpop.xlane.xlu0 %304  ;;  %v364_v23 = vmul.f32 0.0013020834, %v333_v45  ;;  %v538_v45 = vsel %vm461_vm7, %v537_v27, %v533_v41 }
  0xb3   :  { %v351_v24 = vmul.f32 0.0013020834, %v305_v46  ;;  %v462_v46 = vsel %vm461_vm7, %v460_v28, %v455_v42  ;;  %v543_v49 = vsel %vm468_vm8, %v542_v33, %v538_v45 }
  0xb4   :  { %v547_v37 = vrot.slane %v364_v23, %v1237_v53  ;;  %v469_v50 = vsel %vm468_vm8, %v467_v34, %v462_v46 }
  0xb5   :  { %v335_v62 = vpop.xlane.xlu1 %334  ;;  %v474_v38 = vrot.slane %v351_v24, %v1237_v53 }
  0xb6   :  { %v307_v63 = vpop.xlane.xlu0 %306  ;;  %v365_v25 = vmul.f32 0.0013020834, %v335_v62  ;;  %v548_v54 = vsel %vm475_vm9, %v547_v37, %v543_v49 }
  0xb7   :  { %v352_v26 = vmul.f32 0.0013020834, %v307_v63  ;;  %v476_v55 = vsel %vm475_vm9, %v474_v38, %v469_v50 }
  0xb8   :  { %v552_v43 = vrot.slane %v365_v25, %v1239_v56 }
  0xb9   :  { %v337_v14 = vpop.xlane.xlu1 %336  ;;  %v481_v44 = vrot.slane %v352_v26, %v1239_v56 }
  0xba   :  { %v309_v21 = vpop.xlane.xlu0 %308  ;;  %v366_v29 = vmul.f32 0.0013020834, %v337_v14  ;;  %v553_v59 = vsel %vm482_vm10, %v552_v43, %v548_v54 }
  0xbb   :  { %v353_v30 = vmul.f32 0.0013020834, %v309_v21 }
  0xbc   :  { %v557_v47 = vrot.slane %v366_v29, %v1241_v57 }
  0xbd   :  { %v339_v35 = vpop.xlane.xlu1 %338  ;;  %v488_v48 = vrot.slane %v353_v30, %v1241_v57  ;;  %v483_v57 = vsel %vm482_vm10, %v481_v44, %v476_v55 }
  0xbe   :  { %v311_v36 = vpop.xlane.xlu0 %310  ;;  %v367_v39 = vmul.f32 0.0013020834, %v339_v35  ;;  %v558_v60 = vsel %vm489_vm11, %v557_v47, %v553_v59 }
  0xbf   :  { %v354_v40 = vmul.f32 0.0013020834, %v311_v36  ;;  %v490_v61 = vsel %vm489_vm11, %v488_v48, %v483_v57 }
  0xc0   :  { %v562_v3 = vrot.slane %v367_v39, %v1245_v2 }
  0xc1   :  { %v495_v51 = vrot.slane %v354_v40, %v1245_v2  ;;  %v342_v52 = vpop.xlane.xlu1 %341 }
  0xc2   :  { %v315_v53 = vpop.xlane.xlu0 %314  ;;  %v368_v56 = vmul.f32 0.0013020834, %v342_v52  ;;  %v563_v0 = vsel %vm496_vm12, %v562_v3, %v558_v60 }
  0xc3   :  { %v355_v58 = vmul.f32 0.0013020834, %v315_v53  ;;  %v497_v1 = vsel %vm496_vm12, %v495_v51, %v490_v61 }
  0xc4   :  { %v567_v62 = vrot.slane %v368_v56, %v1247_v4 }
  0xc5   :  { %v502_v63 = vrot.slane %v355_v58, %v1247_v4  ;;  %v757_v4 = vld [vmem:[%s1319_s2] ss:$0 sm:$0xff] }
  0xc6   :  { %v568_v5 = vsel %vm503_vm13, %v567_v62, %v563_v0 }
  0xc7   :  { %v504_v2 = vsel %vm503_vm13, %v502_v63, %v497_v1 }
  0xc8   :  { %v570_v6 = vsel %vm569_vm14, %v568_v5, %v504_v2 }
  0xc9   :  { %819 = vmatmul.mubr.msk.f32.vlgmr.msra.gmra.mrb[0].mxu0 %vm571_vm15, %v570_v6 }
 0x19c   :  { %v643_v10 = vpop.f32.mrb[0].mxu0 }
 0x19d   :  { %v644_v11 = vadd.f32 %v757_v4, %v643_v10  ;;  %v820_v12 = vpop.f32.mrb[1].mxu0 }
 0x19f   :  { %v647_v13 = vmax.f32 %v644_v11, 0.0 }
 0x1a1   :  { %854 = vmatmul.mubr.f32.vlgmr.msra.gmra.mrb[0].mxu1 %v647_v13 }
 0x274   :  { %v737_v17 = vpop.f32.mrb[0].mxu1 }
 0x275   :  { %v738_v18 = vadd.f32 %v760_v16, %v737_v17  ;;  %v855_v14 = vpop.f32.mrb[1].mxu1 }
 0x277   :  { %742 = vst.msk [vmem:[#allocation3] sm:$0x3] %vm741_vm0, %v738_v18 }
 0x278   :  { %913 = shalt.err (!%p910_p4)
}
 0x279   :  { %s914_s7 = scalar_lea.hbm %s1322_s5, 32 }
 0x27a   :  { %p915_p5 = scmp.ne.s32.totalorder %s1322_s5, %s914_s7  ;;  %p918_p6 = scmp.lt.u32.totalorder %s914_s7, %s1322_s5 }
 0x27c   :  { %p920_p7 = pnand %p918_p6, %p915_p5 }
 0x27e   :  { %923 = shalt.err (!%p920_p7)
}
 0x27f   :  { %752 = dma.vmem_to_hbm [thread:$0]  %s750_s30, 32, %s1322_s5, [#allocation4]  }
 0x280   :  { %924 = dma.done.wait [#allocation4], 32  }
 0x281   :  { %925 = vsyncadd [#allocation4], 4294967264 }
 0x282   :  { %756 = vsyncpa [#allocation4], 1 }

</bundles_post_ra>
